<compile_context>
chip_gen: v7x
topology: tpu7x:2x2x1
jax: 0.10.0
libtpu: 0.0.40
codegen_flags: <defaults>
</compile_context>

<pallas_src>
import functools

import jax
import jax.numpy as jnp
from jax import lax
from jax.experimental import pallas as pl
from jax.experimental.pallas import tpu as pltpu

MAX_BLOCK_ELEMS = 1024 * 512      # 2 MiB of f32 per input per pipeline buffer
LANE_WIDTHS = (512, 256, 128)     # lane-dense last dims to try (pad-free)


def _fold(v):
    """Reduce a (block_rows, W) tile to a small per-block partial sum."""
    br, w = v.shape
    if br % 8 == 0:
        # Pure re-labeling reshape + VALU adds (no cross-lane work).
        return jnp.sum(v.reshape(br // 8, 8, w), axis=0)         # (8, W)
    # Tiny single-block case only: one cheap cross-sublane reduce.
    return jnp.sum(v, axis=0, keepdims=True)                     # (1, W)


def _focal_loss_block_kernel(x_ref, y_ref, out_ref, *, gamma, hard_labels,
                             block_rows, valid_rows, needs_mask):
    x = x_ref[...].astype(jnp.float32)
    y = y_ref[...].astype(jnp.float32)

    # e = exp(-|x|) is shared by the numerically-stable BCE and the sigmoid.
    e = jnp.exp(-jnp.abs(x))
    t = 1.0 + e
    # BCEWithLogits: max(x, 0) - x*y + log(1 + exp(-|x|))
    bce = jnp.maximum(x, 0.0) - x * y + jnp.log(t)

    # sigmoid(x) = where(x >= 0, 1, e) / (1 + e).
    # Approx reciprocal (EUP slot, which has slack) + 1 Newton step keeps the
    # relative error ~1e-7 while avoiding the VALU-heavy exact divide.
    r = pl.reciprocal(t, approx=True)
    r = r * (2.0 - t * r)
    p = jnp.where(x >= 0.0, 1.0, e) * r

    if hard_labels:                    # exact for y in {0, 1}
        om_pt = jnp.abs(y - p)
    else:                              # general (soft-label) form
        om_pt = 1.0 - (p * y + (1.0 - p) * (1.0 - y))

    if gamma == 2.0:                   # default: square with a mul, no pow
        scale = om_pt * om_pt
    elif gamma == 1.0:
        scale = om_pt
    elif gamma == 0.0:
        scale = None
    else:
        scale = om_pt ** gamma
    focal = bce if scale is None else scale * bce   # alpha applied in wrapper

    if not needs_mask:
        out_ref[...] = _fold(focal)
    else:
        b = pl.program_id(0)
        is_last = b == pl.num_programs(0) - 1

        @pl.when(jnp.logical_not(is_last))
        def _():
            out_ref[...] = _fold(focal)

        @pl.when(is_last)
        def _():
            # Rows past `valid_rows` in the partial last block contain stale
            # VMEM data: zero their contribution before the fold.
            row = b * block_rows + lax.broadcasted_iota(
                jnp.int32, focal.shape, 0)
            out_ref[...] = _fold(jnp.where(row < valid_rows, focal, 0.0))


def focal_loss_pallas(logits, labels, alpha=1.0, gamma=2.0, hard_labels=True):
    assert logits.shape == labels.shape
    assert jnp.issubdtype(logits.dtype, jnp.floating), (
        "focal_loss_pallas expects float logits (f32/bf16/f16)")
    n_valid = int(logits.size)
    if n_valid == 0:
        # torch's mean over an empty tensor is NaN.
        return jnp.float32(float("nan"))

    x = logits.reshape(-1)
    y = labels.reshape(-1)             # keep native dtype; cast in the kernel

    lane_w = next((w for w in LANE_WIDTHS if n_valid % w == 0), None)
    if lane_w is None:
        # Rare ragged case (N not a multiple of 128): minimal (<128 elem)
        # sentinel pad.  logit = -1e4, label = 0 => exp(-1e4) == 0 exactly,
        # so the padded elements contribute exactly 0 to the sum.
        lane_w = 128
        pad = (-n_valid) % lane_w
        x = jnp.pad(x, (0, pad), constant_values=-1e4)
        y = jnp.pad(y, (0, pad), constant_values=0)

    rows = x.size // lane_w
    x2 = x.reshape(rows, lane_w)       # free reshape of a contiguous buffer
    y2 = y.reshape(rows, lane_w)

    max_rows = MAX_BLOCK_ELEMS // lane_w          # multiple of 32 (any dtype)
    block_rows = rows if rows <= max_rows else max_rows
    num_blocks = pl.cdiv(rows, block_rows)
    needs_mask = (rows % block_rows) != 0         # only the last block is ragged
    out_r = 8 if block_rows % 8 == 0 else 1

    kernel = functools.partial(
        _focal_loss_block_kernel,
        gamma=float(gamma), hard_labels=bool(hard_labels),
        block_rows=block_rows, valid_rows=rows, needs_mask=needs_mask)

    x_bytes = x2.size * x2.dtype.itemsize
    y_bytes = y2.size * y2.dtype.itemsize
    out_bytes = num_blocks * out_r * lane_w * 4

    partials = pl.pallas_call(
        kernel,
        out_shape=jax.ShapeDtypeStruct((num_blocks * out_r, lane_w),
                                       jnp.float32),
        grid_spec=pltpu.PrefetchScalarGridSpec(
            num_scalar_prefetch=0,
            grid=(num_blocks,),
            in_specs=[
                pl.BlockSpec((block_rows, lane_w), lambda b: (b, 0)),
                pl.BlockSpec((block_rows, lane_w), lambda b: (b, 0)),
            ],
            out_specs=pl.BlockSpec((out_r, lane_w), lambda b: (b, 0)),
        ),
        compiler_params=pltpu.CompilerParams(
            dimension_semantics=("parallel",),
        ),
        cost_estimate=pl.CostEstimate(
            flops=16 * rows * lane_w,
            transcendentals=3 * rows * lane_w,
            bytes_accessed=x_bytes + y_bytes + out_bytes,
        ),
    )(x2, y2)

    # alpha is a flat scalar weight => hoisted onto the tiny final reduction.
    return jnp.sum(partials) * jnp.float32(alpha / n_valid)


def focal_loss_ref(logits, labels, alpha=1.0, gamma=2.0):
    x = logits.astype(jnp.float32)
    y = labels.astype(jnp.float32)
    bce = jnp.maximum(x, 0.0) - x * y + jnp.log1p(jnp.exp(-jnp.abs(x)))
    p = jax.nn.sigmoid(x)
    pt = p * y + (1.0 - p) * (1.0 - y)
    return jnp.mean(alpha * (1.0 - pt) ** gamma * bce)


if __name__ == "__main__":
    key = jax.random.PRNGKey(0)
    k_logits, k_labels = jax.random.split(key)

    # NCHW-shaped inputs, consistent with a small classification/segmentation head.
    shape = (2, 4, 16, 16)
    logits = jax.random.normal(k_logits, shape, dtype=jnp.float32) * 2.0
    labels = jax.random.bernoulli(k_labels, 0.5, shape).astype(jnp.float32)

    loss = focal_loss_pallas(logits, labels, alpha=1.0, gamma=2.0)
    loss = jax.block_until_ready(loss)

    ref = focal_loss_ref(logits, labels, alpha=1.0, gamma=2.0)
    assert jnp.allclose(loss, ref, rtol=1e-5, atol=1e-6), (loss, ref)

    print("KERNEL_OK")
</pallas_src>

<mosaic_0001>
module attributes {stable_mosaic.version = 11 : i64} {
  func.func @_focal_loss_block_kernel(%arg0: i32, %arg1: memref<4x512xf32, #tpu.memory_space<vmem>>, %arg2: memref<4x512xf32, #tpu.memory_space<vmem>>, %arg3: memref<1x512xf32, #tpu.memory_space<vmem>>) attributes {dimension_semantics = [#tpu.dimension_semantics<parallel>], iteration_bounds = array<i64: 1>, scalar_prefetch = 0 : i64, scratch_operands = 0 : i64, tpu.core_type = #tpu.core_type<tc>, window_params = [{transform_indices = @transform_0, window_bounds = array<i64: 4, 512>}, {transform_indices = @transform_1, window_bounds = array<i64: 4, 512>}, {transform_indices = @transform_2, window_bounds = array<i64: 1, 512>}]} {
    %c0 = arith.constant 0 : index
    %c0_0 = arith.constant 0 : index
    %0 = vector.load %arg1[%c0, %c0_0] : memref<4x512xf32, #tpu.memory_space<vmem>>, vector<4x512xf32>
    %c0_1 = arith.constant 0 : index
    %c0_2 = arith.constant 0 : index
    %1 = vector.load %arg2[%c0_1, %c0_2] : memref<4x512xf32, #tpu.memory_space<vmem>>, vector<4x512xf32>
    %2 = math.absf %0 : vector<4x512xf32>
    %cst = arith.constant 0.000000e+00 : f32
    %3 = vector.broadcast %cst : f32 to vector<4x512xf32>
    %4 = arith.subf %3, %2 : vector<4x512xf32>
    %5 = math.exp %4 : vector<4x512xf32>
    %cst_3 = arith.constant 1.000000e+00 : f32
    %6 = vector.broadcast %cst_3 : f32 to vector<4x512xf32>
    %7 = arith.addf %6, %5 : vector<4x512xf32>
    %cst_4 = arith.constant 0.000000e+00 : f32
    %8 = vector.broadcast %cst_4 : f32 to vector<4x512xf32>
    %9 = arith.maximumf %0, %8 : vector<4x512xf32>
    %10 = arith.mulf %0, %1 : vector<4x512xf32>
    %11 = arith.subf %9, %10 : vector<4x512xf32>
    %12 = math.log %7 : vector<4x512xf32>
    %13 = arith.addf %11, %12 : vector<4x512xf32>
    %14 = tpu.reciprocal %7 {approx = true} : vector<4x512xf32> -> vector<4x512xf32>
    %15 = arith.mulf %7, %14 : vector<4x512xf32>
    %cst_5 = arith.constant 2.000000e+00 : f32
    %16 = vector.broadcast %cst_5 : f32 to vector<4x512xf32>
    %17 = arith.subf %16, %15 : vector<4x512xf32>
    %18 = arith.mulf %14, %17 : vector<4x512xf32>
    %cst_6 = arith.constant 0.000000e+00 : f32
    %19 = vector.broadcast %cst_6 : f32 to vector<4x512xf32>
    %20 = arith.cmpf oge, %0, %19 : vector<4x512xf32>
    %cst_7 = arith.constant 1.000000e+00 : f32
    %21 = vector.broadcast %cst_7 : f32 to vector<4x512xf32>
    %22 = arith.select %20, %21, %5 : vector<4x512xi1>, vector<4x512xf32>
    %23 = arith.mulf %22, %18 : vector<4x512xf32>
    %24 = arith.subf %1, %23 : vector<4x512xf32>
    %25 = math.absf %24 : vector<4x512xf32>
    %26 = arith.mulf %25, %25 : vector<4x512xf32>
    %27 = arith.mulf %26, %13 : vector<4x512xf32>
    %cst_8 = arith.constant dense<0.000000e+00> : vector<512xf32>
    %28 = vector.multi_reduction <add>, %27, %cst_8 [0] : vector<4x512xf32> to vector<512xf32>
    %29 = vector.shape_cast %28 : vector<512xf32> to vector<1x512xf32>
    %c0_9 = arith.constant 0 : index
    %c0_10 = arith.constant 0 : index
    %30 = vector.load %arg3[%c0_9, %c0_10] : memref<1x512xf32, #tpu.memory_space<vmem>>, vector<1x512xf32>
    tpu.vector_store %arg3[%c0_9, %c0_10], %29 {strides = array<i32>} : memref<1x512xf32, #tpu.memory_space<vmem>>, vector<1x512xf32>,
    return
  }
  func.func @transform_0(%arg0: i32) -> (i32, i32) {
    %c0_i32 = arith.constant 0 : i32
    %c0_i32_0 = arith.constant 0 : i32
    return %arg0, %c0_i32 : i32, i32
  }
  func.func @transform_1(%arg0: i32) -> (i32, i32) {
    %c0_i32 = arith.constant 0 : i32
    %c0_i32_0 = arith.constant 0 : i32
    return %arg0, %c0_i32 : i32, i32
  }
  func.func @transform_2(%arg0: i32) -> (i32, i32) {
    %c0_i32 = arith.constant 0 : i32
    %c0_i32_0 = arith.constant 0 : i32
    return %arg0, %c0_i32 : i32, i32
  }
}

</mosaic_0001>

<bundles_post_ra>
// kernel: tpu_custom_call.1
= control target key start
LH: loop header
LB: loop body
LE: loop exit
PB: predicated region body
PF: predicated region fallthrough
CT: control target
= control target key end

     0   :  { %7 = vsyncpa [#allocation3], 0  ;;  %s312_s0 = inlined_call_operand.hbm [shape: f32[4,512], index: 0, kind: input, shape index: {}]   ;;  %s313_s1 = inlined_call_operand.hbm [shape: f32[4,512], index: 1, kind: input, shape index: {}]   ;;  %s314_s2 = inlined_call_operand.hbm [shape: f32[1,512], index: 2, kind: output, shape index: {}]  }
   0x1   :  { %8 = vsyncpa [#allocation6], 0 }
   0x2   :  { %9 = vsyncpa [#allocation4], 0  ;;  %s257_s9 = smov [#allocation2]   ;;  %s258_s11 = smov [#allocation5]  }
   0x3   :  { %s16_s10 = sshll.u32 %s257_s9, 4  ;;  %s26_s12 = sshll.u32 %s258_s11, 4  ;;  %s17_s10 = int_to_ptr.vmem [resolvable:$true] %s16_s10  ;;  %s27_s12 = int_to_ptr.vmem [resolvable:$true] %s26_s12 }
   0x4   :  { %s185_s15 = scalar_lea.hbm %s312_s0, 256 }
   0x5   :  { %p186_p0 = scmp.ne.s32.totalorder %s312_s0, %s185_s15  ;;  %p189_p1 = scmp.lt.u32.totalorder %s185_s15, %s312_s0 }
   0x7   :  { %p191_p2 = pnand %p189_p1, %p186_p0 }
   0x9   :  { %194 = shalt.err (!%p191_p2)
}
   0xa   :  { %s195_s20 = scalar_lea.vmem %s17_s10, 256  ;;  %p200_p4 = scmp.lt.s32.totalorder %s17_s10, %s17_s10 }
   0xb   :  { %p196_p3 = scmp.ne.s32.totalorder %s17_s10, %s195_s20  ;;  %p201_p5 = scmp.lt.s32.totalorder %s195_s20, %s195_s20 }
   0xd   :  { %p202_p6 = por %p201_p5, %p200_p4 }
   0xf   :  { %p203_p7 = pnand %p202_p6, %p196_p3 }
  0x11   :  { %206 = shalt.err (!%p203_p7)
}
  0x12   :  { %19 = dma.hbm_to_vmem [thread:$0]  %s312_s0, 256, %s17_s10, [#allocation3]  }
  0x13   :  { %s207_s25 = scalar_lea.hbm %s313_s1, 256 }
  0x14   :  { %p208_p8 = scmp.ne.s32.totalorder %s313_s1, %s207_s25  ;;  %p211_p9 = scmp.lt.u32.totalorder %s207_s25, %s313_s1 }
  0x16   :  { %p213_p10 = pnand %p211_p9, %p208_p8 }
  0x18   :  { %216 = shalt.err (!%p213_p10)
}
  0x19   :  { %s217_s30 = scalar_lea.vmem %s27_s12, 256  ;;  %p222_p12 = scmp.lt.s32.totalorder %s27_s12, %s27_s12 }
  0x1a   :  { %p218_p11 = scmp.ne.s32.totalorder %s27_s12, %s217_s30  ;;  %p223_p13 = scmp.lt.s32.totalorder %s217_s30, %s217_s30 }
  0x1c   :  { %p224_p0 = por %p223_p13, %p222_p12 }
  0x1e   :  { %p225_p1 = pnand %p224_p0, %p218_p11 }
  0x20   :  { %228 = shalt.err (!%p225_p1)
}
  0x21   :  { %29 = dma.hbm_to_vmem [thread:$0]  %s313_s1, 256, %s27_s12, [#allocation6]  }
  0x22   :  { %251 = dma.done.wait [#allocation3], 256  }
  0x23   :  { %252 = vsyncadd [#allocation3], 4294967040 }
  0x24   :  { %253 = dma.done.wait [#allocation6], 256  }
  0x25   :  { %254 = vsyncadd [#allocation6], 4294967040  ;;  %v36_v0 = vld [vmem:[#allocation2] sm:$0xff]  ;;  %v37_v1 = vld [vmem:[#allocation2 + $0x8] sm:$0xff]  ;;  %vm90_vm2 = vcmask 1043456   ;;  %v128_v62 = vlaneseq  ;;  %s260_s1 = smov [#allocation7]  }
  0x26   :  { %v40_v2 = vand.u32 2147483647, %v36_v0  ;;  %v41_v3 = vand.u32 2147483647, %v37_v1  ;;  %v38_v13 = vld [vmem:[#allocation5] sm:$0xff]  ;;  %v39_v15 = vld [vmem:[#allocation5 + $0x8] sm:$0xff] }
  0x27   :  { %vm70_vm0 = vcmp.ge.f32.partialorder %v36_v0, 0.0  ;;  %vm71_vm1 = vcmp.ge.f32.partialorder %v37_v1, 0.0  ;;  %v50_v18 = vmax.f32 %v36_v0, 0.0  ;;  %v52_v19 = vmul.f32 %v38_v13, %v36_v0  ;;  %s159_s4 = sshll.u32 %s260_s1, 4  ;;  %s160_s4 = int_to_ptr.vmem [resolvable:$true] %s159_s4 }
  0x28   :  { %v42_v4 = vsub.f32 0.0, %v40_v2  ;;  %v43_v5 = vsub.f32 0.0, %v41_v3  ;;  %v51_v22 = vmax.f32 %v37_v1, 0.0  ;;  %v53_v23 = vmul.f32 %v39_v15, %v37_v1  ;;  %s229_s5 = scalar_lea.vmem %s160_s4, 64  ;;  %p234_p3 = scmp.lt.s32.totalorder %s160_s4, %s160_s4 }
  0x29   :  { %v54_v30 = vsub.f32 %v50_v18, %v52_v19  ;;  %v259_v60 = vmov 1966171168   ;;  %vm150_vm3 = vcmp.lt.s32.totalorder %v128_v62, 512  ;;  %p230_p2 = scmp.ne.s32.totalorder %s160_s4, %s229_s5  ;;  %p235_p4 = scmp.lt.s32.totalorder %s229_s5, %s229_s5 }
  0x2a   :  { %v44_v6 = vmul.f32 1.442695, %v42_v4  ;;  %v46_v7 = vmul.f32 1.442695, %v43_v5  ;;  %v55_v33 = vsub.f32 %v51_v22, %v53_v23  ;;  %v126_v61 = vunpack.c.l.s4 %v259_v60 }
  0x2b   :  { %p236_p5 = por %p235_p4, %p234_p3 }
  0x2c   :  { %173 = vpow2.f32 %v44_v6 }
  0x2d   :  { %175 = vpow2.f32 %v46_v7  ;;  %v127_v7 = vunpack.c.0.s8 %v126_v61  ;;  %p237_p6 = pnand %p236_p5, %p230_p2 }
  0x36   :  { %v174_v8 = vpop.eup %173 }
  0x37   :  { %v176_v9 = vpop.eup %175  ;;  %v48_v10 = vadd.f32 1.0, %v174_v8  ;;  %v72_v25 = vsel %vm70_vm0, 1.0, %v174_v8  ;;  %v129_v8 = vshrl.u32 %v128_v62, 7 }
  0x38   :  { %v49_v11 = vadd.f32 1.0, %v176_v9  ;;  %v73_v28 = vsel %vm71_vm1, 1.0, %v176_v9 }
  0x39   :  { %177 = vrcp.f32 %v48_v10 }
  0x3a   :  { %179 = vrcp.f32 %v49_v11 }
  0x3b   :  { %181 = vlog2.f32 %v48_v10 }
  0x3c   :  { %183 = vlog2.f32 %v49_v11 }
  0x43   :  { %v178_v12 = vpop.eup %177 }
  0x44   :  { %v180_v14 = vpop.eup %179  ;;  %v64_v16 = vmul.f32 %v178_v12, %v48_v10 }
  0x45   :  { %v65_v17 = vmul.f32 %v180_v14, %v49_v11  ;;  %v182_v21 = vpop.eup %181 }
  0x46   :  { %v66_v20 = vsub.f32 2.0, %v64_v16  ;;  %v184_v26 = vpop.eup %183  ;;  %v57_v31 = vmul.f32 0.6931472, %v182_v21  ;;  %v130_v16 = vsub.s32 %v127_v7, %v129_v8 }
  0x47   :  { %v67_v24 = vsub.f32 2.0, %v65_v17  ;;  %v59_v34 = vmul.f32 0.6931472, %v184_v26 }
  0x48   :  { %v68_v27 = vmul.f32 %v178_v12, %v66_v20  ;;  %v60_v38 = vadd.f32 %v57_v31, %v54_v30 }
  0x49   :  { %v69_v29 = vmul.f32 %v180_v14, %v67_v24  ;;  %v61_v40 = vadd.f32 %v59_v34, %v55_v33 }
  0x4a   :  { %v74_v32 = vmul.f32 %v72_v25, %v68_v27 }
  0x4b   :  { %v75_v35 = vmul.f32 %v73_v28, %v69_v29 }
  0x4c   :  { %v76_v36 = vsub.f32 %v38_v13, %v74_v32 }
  0x4d   :  { %v77_v37 = vsub.f32 %v39_v15, %v75_v35 }
  0x4e   :  { %v78_v39 = vand.u32 2147483647, %v76_v36 }
  0x4f   :  { %v79_v41 = vand.u32 2147483647, %v77_v37 }
  0x50   :  { %v80_v42 = vmul.f32 %v78_v39, %v78_v39 }
  0x51   :  { %v81_v43 = vmul.f32 %v79_v41, %v79_v41 }
  0x52   :  { %v82_v44 = vmul.f32 %v80_v42, %v60_v38 }
  0x53   :  { %v83_v45 = vmul.f32 %v81_v43, %v61_v40 }
  0x54   :  { %v86_v46 = vcombine.high %v82_v44, %v82_v44  ;;  %v91_v47 = vsel %vm90_vm2, %v82_v44, 0.0 }
  0x55   :  { %v87_v48 = vcombine.high %v83_v45, %v83_v45  ;;  %v92_v49 = vrot.slane %v91_v47, 4  ;;  %v105_v50 = vsel %vm90_vm2, %v83_v45, 0.0 }
  0x56   :  { %v98_v51 = vsel %vm90_vm2, %v86_v46, 0.0  ;;  %v106_v52 = vrot.slane %v105_v50, 4 }
  0x57   :  { %v93_v53 = vadd.f32 %v92_v49, %v91_v47  ;;  %v99_v54 = vrot.slane %v98_v51, 4  ;;  %v112_v55 = vsel %vm90_vm2, %v87_v48, 0.0 }
  0x58   :  { %v107_v56 = vadd.f32 %v106_v52, %v105_v50  ;;  %v113_v57 = vrot.slane %v112_v55, 4 }
  0x59   :  { %v94_v58 = vrot.slane %v93_v53, 2  ;;  %v100_v59 = vadd.f32 %v99_v54, %v98_v51 }
  0x5a   :  { %v108_v63 = vrot.slane %v107_v56, 2  ;;  %v114_v0 = vadd.f32 %v113_v57, %v112_v55 }
  0x5b   :  { %v95_v1 = vadd.f32 %v94_v58, %v93_v53  ;;  %v101_v2 = vrot.slane %v100_v59, 2 }
  0x5c   :  { %v109_v3 = vadd.f32 %v108_v63, %v107_v56  ;;  %v115_v4 = vrot.slane %v114_v0, 2 }
  0x5d   :  { %v96_v5 = vrot.slane %v95_v1, 1  ;;  %v102_v6 = vadd.f32 %v101_v2, %v100_v59 }
  0x5e   :  { %v110_v9 = vrot.slane %v109_v3, 1  ;;  %v116_v10 = vadd.f32 %v115_v4, %v114_v0 }
  0x5f   :  { %v97_v11 = vadd.f32 %v96_v5, %v95_v1  ;;  %v103_v12 = vrot.slane %v102_v6, 1 }
  0x60   :  { %v111_v13 = vadd.f32 %v110_v9, %v109_v3  ;;  %v117_v14 = vrot.slane %v116_v10, 1 }
  0x61   :  { %v104_v15 = vadd.f32 %v103_v12, %v102_v6 }
  0x62   :  { %v118_v17 = vadd.f32 %v117_v14, %v116_v10 }
  0x63   :  { %v123_v18 = vcombine.low %v97_v11, %v104_v15 }
  0x64   :  { %v124_v19 = vcombine.low %v111_v13, %v118_v17 }
  0x65   :  { %v131_v20 = vrot.slane %v123_v18, %v130_v16 }
  0x66   :  { %v138_v21 = vrot.slane %v124_v19, %v130_v16 }
  0x68   :  { %v139_v22 = vcombine.low %v131_v20, %v138_v21 }
  0x6a   :  { %v146_v23 = vrot.slane %v139_v22, %v130_v16 }
  0x6c   :  { %152 = vst.msk [vmem:[#allocation7] sm:$0xf] %vm150_vm3, %v146_v23 }
  0x6d   :  { %240 = shalt.err (!%p237_p6)
}
  0x6e   :  { %s241_s8 = scalar_lea.hbm %s314_s2, 64 }
  0x6f   :  { %p242_p7 = scmp.ne.s32.totalorder %s314_s2, %s241_s8  ;;  %p245_p8 = scmp.lt.u32.totalorder %s241_s8, %s314_s2 }
  0x71   :  { %p247_p9 = pnand %p245_p8, %p242_p7 }
  0x73   :  { %250 = shalt.err (!%p247_p9)
}
  0x74   :  { %162 = dma.vmem_to_hbm [thread:$0]  %s160_s4, 64, %s314_s2, [#allocation4]  }
  0x75   :  { %255 = dma.done.wait [#allocation4], 64  }
  0x76   :  { %256 = vsyncadd [#allocation4], 4294967232 }
  0x77   :  { %166 = vsyncpa [#allocation3], 1 }
  0x78   :  { %167 = vsyncpa [#allocation6], 1 }
  0x79   :  { %168 = vsyncpa [#allocation4], 1 }

</bundles_post_ra>
